<compile_context>
chip_gen: v6e
topology: v6e:2x2x1
jax: 0.10.0
libtpu: 0.0.40
codegen_flags: <defaults>
</compile_context>

<pallas_src>
import functools
import math

import jax
import jax.numpy as jnp
from jax.experimental import pallas as pl
from jax.experimental.pallas import tpu as pltpu


_TARGET_BLOCK_F32_BYTES = 2 * 1024 * 1024   # ~2 MiB of f32 compute per block


def _softmax_kernel(x_ref, o_ref, *, axis: int, logit: bool):
    x = x_ref[...].astype(jnp.float32)
    # forward(): x = x - max(x, dim, keepdim=True)
    m = jnp.max(x, axis=axis, keepdims=True)
    x = x - m
    # nn.Softmax / nn.LogSoftmax along the same dim (their internal
    # max-subtract is a no-op since max is now 0).
    e = jnp.exp(x)
    s = jnp.sum(e, axis=axis, keepdims=True)
    if logit:
        out = x - jnp.log(s)                        # log-softmax
    else:
        out = e * pl.reciprocal(s, approx=False)    # softmax (exact reciprocal)
    o_ref[...] = out.astype(o_ref.dtype)


def _round_down(x, m):
    return (x // m) * m


def custom_softmax(x, dim=1, logit=False):
    """Equivalent of CustomSoftmax(dim, logit).forward(x) for N*C*H*W*(Z) inputs."""
    ndim = x.ndim
    dim = dim % ndim
    shape = x.shape
    C = shape[dim]
    itemsize = jnp.dtype(x.dtype).itemsize

    pre = int(math.prod(shape[:dim]))
    post = int(math.prod(shape[dim + 1:]))

    if post == 1:
        # Reduction axis is the trailing memory axis (dim is last, or all
        # trailing dims are size 1): flatten to (M, C), reduce over lanes.
        M = pre
        x2 = x.reshape(M, C)
        # sublane packing: 8 rows (32-bit), 16 (bf16/f16), 32 (8-bit)
        pack = {4: 8, 2: 16, 1: 32}.get(itemsize, 8)
        tm = max(pack, _round_down(_TARGET_BLOCK_F32_BYTES // (C * 4), pack))
        if tm >= M:
            tm = M
        grid = (pl.cdiv(M, tm),)
        block = (tm, C)
        in_specs = [pl.BlockSpec(block, lambda i: (i, 0))]
        out_specs = pl.BlockSpec(block, lambda i: (i, 0))
        reduce_axis = -1
        out_shape2 = (M, C)
        # TODO(synk): when C << 128 on this path, lanes are under-filled; a
        #   segmented in-lane reduction would pack multiple rows per vreg.
    else:
        # Pure reshape (no transpose, no HBM traffic): (pre, C, post);
        # reduce over axis=-2 so the big trailing axis stays lane-dense.
        x2 = x.reshape(pre, C, post)
        max_tpost = max(128, _round_down(_TARGET_BLOCK_F32_BYTES // (C * 4), 128))
        tpost = post if post <= max_tpost else max_tpost
        bpre = min(pre, max(1, _TARGET_BLOCK_F32_BYTES // (C * tpost * 4)))
        grid = (pl.cdiv(pre, bpre), pl.cdiv(post, tpost))
        block = (bpre, C, tpost)
        in_specs = [pl.BlockSpec(block, lambda i, j: (i, 0, j))]
        out_specs = pl.BlockSpec(block, lambda i, j: (i, 0, j))
        reduce_axis = -2
        out_shape2 = (pre, C, post)
        # TODO(synk): for extremely wide C (a (*, C, 128) block alone exceeding
        #   VMEM), add an 'arbitrary' grid axis over C with an online max/sum
        #   accumulator (pl.when init/finalize) instead of a full-C block.

    # Explicit scoped-VMEM budget: double-buffered in+out blocks plus f32
    # temporaries plus headroom; clamped well under v7x's 64 MiB per-TC VMEM.
    blk_elems = int(math.prod(block))
    io_bytes = blk_elems * itemsize
    vmem_est = 4 * io_bytes + 6 * blk_elems * 4 + (8 << 20)
    vmem_limit = int(min(48 << 20, max(32 << 20, vmem_est)))

    kernel = functools.partial(_softmax_kernel, axis=reduce_axis, logit=logit)
    out2 = pl.pallas_call(
        kernel,
        out_shape=jax.ShapeDtypeStruct(out_shape2, x.dtype),
        grid_spec=pltpu.PrefetchScalarGridSpec(
            num_scalar_prefetch=0,
            grid=grid,
            in_specs=in_specs,
            out_specs=out_specs,
        ),
        compiler_params=pltpu.CompilerParams(
            dimension_semantics=("parallel",) * len(grid),
            vmem_limit_bytes=vmem_limit,
        ),
    )(x2)

    return out2.reshape(shape)


if __name__ == "__main__":
    key = jax.random.PRNGKey(0)
    # N*C*H*W input, softmax over channels (dim=1), matching PyTorch semantics.
    x = jax.random.normal(key, (2, 4, 16, 16), dtype=jnp.float32)

    # Softmax variant (logit=False) over channels.
    y = jax.block_until_ready(custom_softmax(x, dim=1, logit=False))
    # LogSoftmax variant (logit=True) over channels.
    y_log = jax.block_until_ready(custom_softmax(x, dim=1, logit=True))
    # Lane-axis path (dim = last).
    y_last = jax.block_until_ready(custom_softmax(x, dim=3, logit=False))
    # Trailing-singleton path (dim=1 with H=W=1 -> falls back to lane-axis path).
    x_s = jax.random.normal(jax.random.PRNGKey(0), (2, 8, 1, 1), dtype=jnp.float32)
    y_s = jax.block_until_ready(custom_softmax(x_s, dim=1, logit=False))

    # Sanity checks against pure-JAX references.
    ref = jax.nn.softmax(x - jnp.max(x, axis=1, keepdims=True), axis=1)
    ref_log = jax.nn.log_softmax(x - jnp.max(x, axis=1, keepdims=True), axis=1)
    ref_last = jax.nn.softmax(x - jnp.max(x, axis=3, keepdims=True), axis=3)
    ref_s = jax.nn.softmax(x_s - jnp.max(x_s, axis=1, keepdims=True), axis=1)
    assert jnp.allclose(y, ref, atol=1e-6), "softmax mismatch"
    assert jnp.allclose(y_log, ref_log, atol=1e-5), "log-softmax mismatch"
    assert jnp.allclose(y_last, ref_last, atol=1e-6), "last-dim softmax mismatch"
    assert jnp.allclose(y_s, ref_s, atol=1e-6), "singleton-trailing softmax mismatch"
    assert jnp.allclose(jnp.sum(y, axis=1), 1.0, atol=1e-5), "rows must sum to 1"

    print("KERNEL_OK")
</pallas_src>

<mosaic_0001>
module attributes {stable_mosaic.version = 11 : i64} {
  func.func @_softmax_kernel(%arg0: i32, %arg1: i32, %arg2: memref<2x4x256xf32, #tpu.memory_space<vmem>>, %arg3: memref<2x4x256xf32, #tpu.memory_space<vmem>>) attributes {dimension_semantics = [#tpu.dimension_semantics<parallel>, #tpu.dimension_semantics<parallel>], iteration_bounds = array<i64: 1, 1>, scalar_prefetch = 0 : i64, scratch_operands = 0 : i64, tpu.core_type = #tpu.core_type<tc>, window_params = [{transform_indices = @transform_0, window_bounds = array<i64: 2, 4, 256>}, {transform_indices = @transform_1, window_bounds = array<i64: 2, 4, 256>}]} {
    %c0 = arith.constant 0 : index
    %c0_0 = arith.constant 0 : index
    %c0_1 = arith.constant 0 : index
    %0 = vector.load %arg2[%c0, %c0_0, %c0_1] : memref<2x4x256xf32, #tpu.memory_space<vmem>>, vector<2x4x256xf32>
    %cst = arith.constant dense<0xFF800000> : vector<2x256xf32>
    %1 = vector.multi_reduction <maximumf>, %0, %cst [1] : vector<2x4x256xf32> to vector<2x256xf32>
    %2 = vector.shape_cast %1 : vector<2x256xf32> to vector<2x1x256xf32>
    %3 = vector.broadcast %2 : vector<2x1x256xf32> to vector<2x4x256xf32>
    %4 = arith.subf %0, %3 : vector<2x4x256xf32>
    %5 = math.exp %4 : vector<2x4x256xf32>
    %cst_2 = arith.constant dense<0.000000e+00> : vector<2x256xf32>
    %6 = vector.multi_reduction <add>, %5, %cst_2 [1] : vector<2x4x256xf32> to vector<2x256xf32>
    %7 = vector.shape_cast %6 : vector<2x256xf32> to vector<2x1x256xf32>
    %8 = tpu.reciprocal %7 : vector<2x1x256xf32> -> vector<2x1x256xf32>
    %9 = vector.broadcast %8 : vector<2x1x256xf32> to vector<2x4x256xf32>
    %10 = arith.mulf %5, %9 : vector<2x4x256xf32>
    %c0_3 = arith.constant 0 : index
    %c0_4 = arith.constant 0 : index
    %c0_5 = arith.constant 0 : index
    %11 = vector.load %arg3[%c0_3, %c0_4, %c0_5] : memref<2x4x256xf32, #tpu.memory_space<vmem>>, vector<2x4x256xf32>
    tpu.vector_store %arg3[%c0_3, %c0_4, %c0_5], %10 {strides = array<i32>} : memref<2x4x256xf32, #tpu.memory_space<vmem>>, vector<2x4x256xf32>,
    return
  }
  func.func @transform_0(%arg0: i32, %arg1: i32) -> (i32, i32, i32) {
    %c0_i32 = arith.constant 0 : i32
    %c0_i32_0 = arith.constant 0 : i32
    return %arg0, %c0_i32, %arg1 : i32, i32, i32
  }
  func.func @transform_1(%arg0: i32, %arg1: i32) -> (i32, i32, i32) {
    %c0_i32 = arith.constant 0 : i32
    %c0_i32_0 = arith.constant 0 : i32
    return %arg0, %c0_i32, %arg1 : i32, i32, i32
  }
}

</mosaic_0001>

<bundles_post_ra>
// kernel: tpu_custom_call.1
= control target key start
LH: loop header
LB: loop body
LE: loop exit
PB: predicated region body
PF: predicated region fallthrough
CT: control target
= control target key end

     0   :  { %6 = vsyncpa [#allocation3], 0  ;;  %s237_s0 = inlined_call_operand.hbm [shape: f32[2,4,256], index: 0, kind: input, shape index: {}]   ;;  %s238_s1 = inlined_call_operand.hbm [shape: f32[2,4,256], index: 1, kind: output, shape index: {}]  }
   0x1   :  { %7 = vsyncpa [#allocation4], 0  ;;  %s203_s6 = smov [#allocation2]  }
   0x2   :  { %s13_s7 = sshll.u32 %s203_s6, 4  ;;  %s14_s7 = int_to_ptr.vmem [resolvable:$true] %s13_s7 }
   0x3   :  { %s167_s8 = scalar_lea.vmem %s14_s7, 256  ;;  %p172_p1 = scmp.lt.s32.totalorder %s14_s7, %s14_s7 }
   0x4   :  { %p168_p0 = scmp.ne.s32.totalorder %s14_s7, %s167_s8  ;;  %p173_p2 = scmp.lt.s32.totalorder %s167_s8, %s167_s8 }
   0x6   :  { %p174_p3 = por %p173_p2, %p172_p1 }
   0x8   :  { %p175_p4 = pnand %p174_p3, %p168_p0 }
   0xa   :  { %178 = shalt.err (!%p175_p4)
}
   0xb   :  { %s204_s9 = smov 128   ;;  %s205_s10 = smov 8  }
   0xc   :  { %19 = dma.hbm_to_vmem [thread:$0]  %s237_s0, 256, %s14_s7, [#allocation3], %s204_s9, %s204_s9, %s205_s10  }
   0xd   :  { %199 = dma.done.wait [#allocation3], 256  }
   0xe   :  { %200 = vsyncadd [#allocation3], 4294967040  ;;  %vm31_vm0 = vcmask 1043456   ;;  %v23_v0 = vld [vmem:[#allocation2] sm:$0xff]  ;;  %v24_v1 = vld [vmem:[#allocation2 + $0x8] sm:$0xff]  ;;  %s206_s0 = smov [#allocation5]  }
   0xf   :  { %v27_v2 = vcombine.high %v23_v0, %v23_v0  ;;  %v32_v3 = vsel %vm31_vm0, %v23_v0, -inf  ;;  %v28_v4 = vcombine.high %v24_v1, %v24_v1  ;;  %v46_v5 = vsel %vm31_vm0, %v24_v1, -inf  ;;  %s129_s13 = sshll.u32 %s206_s0, 4  ;;  %s130_s13 = int_to_ptr.vmem [resolvable:$true] %s129_s13 }
  0x10   :  { %v33_v6 = vrot.slane %v32_v3, 4  ;;  %v47_v7 = vrot.slane %v46_v5, 4  ;;  %s179_s14 = scalar_lea.vmem %s130_s13, 256  ;;  %p184_p6 = scmp.lt.s32.totalorder %s130_s13, %s130_s13 }
  0x11   :  { %v39_v8 = vsel %vm31_vm0, %v27_v2, -inf  ;;  %v53_v9 = vsel %vm31_vm0, %v28_v4, -inf  ;;  %p180_p5 = scmp.ne.s32.totalorder %s130_s13, %s179_s14  ;;  %p185_p7 = scmp.lt.s32.totalorder %s179_s14, %s179_s14 }
  0x12   :  { %v34_v10 = vmax.f32 %v32_v3, %v33_v6  ;;  %v40_v11 = vrot.slane %v39_v8, 4  ;;  %v48_v12 = vmax.f32 %v46_v5, %v47_v7  ;;  %v54_v13 = vrot.slane %v53_v9, 4 }
  0x13   :  { %p186_p8 = por %p185_p7, %p184_p6 }
  0x14   :  { %v35_v14 = vrot.slane %v34_v10, 2  ;;  %v41_v15 = vmax.f32 %v39_v8, %v40_v11  ;;  %v49_v16 = vrot.slane %v48_v12, 2  ;;  %v55_v17 = vmax.f32 %v53_v9, %v54_v13 }
  0x15   :  { %p187_p9 = pnand %p186_p8, %p180_p5 }
  0x16   :  { %v36_v18 = vmax.f32 %v34_v10, %v35_v14  ;;  %v42_v19 = vrot.slane %v41_v15, 2  ;;  %v50_v20 = vmax.f32 %v48_v12, %v49_v16  ;;  %v56_v21 = vrot.slane %v55_v17, 2 }
  0x18   :  { %v37_v22 = vrot.slane %v36_v18, 1  ;;  %v43_v23 = vmax.f32 %v41_v15, %v42_v19  ;;  %v51_v24 = vrot.slane %v50_v20, 1  ;;  %v57_v25 = vmax.f32 %v55_v17, %v56_v21 }
  0x1a   :  { %v38_v26 = vmax.f32 %v36_v18, %v37_v22  ;;  %v44_v27 = vrot.slane %v43_v23, 1  ;;  %v52_v28 = vmax.f32 %v50_v20, %v51_v24  ;;  %v58_v29 = vrot.slane %v57_v25, 1 }
  0x1c   :  { %v45_v30 = vmax.f32 %v43_v23, %v44_v27  ;;  %v59_v31 = vmax.f32 %v57_v25, %v58_v29 }
  0x1e   :  { %v64_v32 = vcombine.low %v38_v26, %v45_v30  ;;  %v65_v33 = vcombine.low %v52_v28, %v59_v31 }
  0x20   :  { %v68_v34 = vsub.f32 %v23_v0, %v64_v32  ;;  %v69_v35 = vsub.f32 %v24_v1, %v65_v33 }
  0x22   :  { %v70_v36 = vmul.f32 1.442695, %v68_v34  ;;  %v72_v37 = vmul.f32 1.442695, %v69_v35 }
  0x24   :  { %147 = vpow2.f32 %v70_v36 }
  0x25   :  { %149 = vpow2.f32 %v72_v37 }
  0x31   :  { %v148_v38 = vpop.eup %147 }
  0x32   :  { %v150_v39 = vpop.eup %149  ;;  %v76_v40 = vcombine.high %v148_v38, %v148_v38  ;;  %v80_v41 = vsel %vm31_vm0, %v148_v38, 0.0 }
  0x33   :  { %v81_v42 = vrot.slane %v80_v41, 4  ;;  %v77_v43 = vcombine.high %v150_v39, %v150_v39  ;;  %v94_v44 = vsel %vm31_vm0, %v150_v39, 0.0 }
  0x34   :  { %v87_v45 = vsel %vm31_vm0, %v76_v40, 0.0  ;;  %v95_v46 = vrot.slane %v94_v44, 4 }
  0x35   :  { %v82_v47 = vadd.f32 %v81_v42, %v80_v41  ;;  %v88_v48 = vrot.slane %v87_v45, 4  ;;  %v101_v49 = vsel %vm31_vm0, %v77_v43, 0.0 }
  0x36   :  { %v96_v50 = vadd.f32 %v95_v46, %v94_v44  ;;  %v102_v51 = vrot.slane %v101_v49, 4 }
  0x37   :  { %v83_v52 = vrot.slane %v82_v47, 2  ;;  %v89_v53 = vadd.f32 %v88_v48, %v87_v45 }
  0x38   :  { %v97_v54 = vrot.slane %v96_v50, 2  ;;  %v103_v55 = vadd.f32 %v102_v51, %v101_v49 }
  0x39   :  { %v84_v56 = vadd.f32 %v83_v52, %v82_v47  ;;  %v90_v57 = vrot.slane %v89_v53, 2 }
  0x3a   :  { %v98_v58 = vadd.f32 %v97_v54, %v96_v50  ;;  %v104_v59 = vrot.slane %v103_v55, 2 }
  0x3b   :  { %v85_v60 = vrot.slane %v84_v56, 1  ;;  %v91_v61 = vadd.f32 %v90_v57, %v89_v53 }
  0x3c   :  { %v99_v62 = vrot.slane %v98_v58, 1  ;;  %v105_v63 = vadd.f32 %v104_v59, %v103_v55 }
  0x3d   :  { %v86_v0 = vadd.f32 %v85_v60, %v84_v56  ;;  %v92_v1 = vrot.slane %v91_v61, 1 }
  0x3e   :  { %v100_v2 = vadd.f32 %v99_v62, %v98_v58  ;;  %v106_v3 = vrot.slane %v105_v63, 1 }
  0x3f   :  { %v93_v4 = vadd.f32 %v92_v1, %v91_v61  ;;  %151 = vrcp.f32 %v86_v0 }
  0x40   :  { %v107_v5 = vadd.f32 %v106_v3, %v105_v63  ;;  %153 = vrcp.f32 %v100_v2 }
  0x41   :  { %155 = vrcp.f32 %v93_v4 }
  0x42   :  { %157 = vrcp.f32 %v107_v5 }
  0x4c   :  { %v152_v6 = vpop.eup %151 }
  0x4d   :  { %v154_v7 = vpop.eup %153 }
  0x4e   :  { %v156_v8 = vpop.eup %155 }
  0x4f   :  { %v158_v9 = vpop.eup %157  ;;  %v116_v10 = vcombine.low %v152_v6, %v156_v8 }
  0x50   :  { %v117_v11 = vcombine.low %v154_v7, %v158_v9 }
  0x51   :  { %v120_v12 = vmul.f32 %v148_v38, %v116_v10 }
  0x52   :  { %v121_v13 = vmul.f32 %v150_v39, %v117_v11 }
  0x53   :  { %122 = vst [vmem:[#allocation5] sm:$0xff] %v120_v12 }
  0x54   :  { %123 = vst [vmem:[#allocation5 + $0x8] sm:$0xff] %v121_v13 }
  0x55   :  { %190 = shalt.err (!%p187_p9)
}
  0x56   :  { %135 = dma.vmem_to_hbm [thread:$0]  %s130_s13, 256, %s238_s1, [#allocation4], %s204_s9, %s204_s9, %s205_s10  }
  0x57   :  { %201 = dma.done.wait [#allocation4], 256  }
  0x58   :  { %202 = vsyncadd [#allocation4], 4294967040 }
  0x59   :  { %139 = vsyncpa [#allocation3], 1 }
  0x5a   :  { %140 = vsyncpa [#allocation4], 1 }

</bundles_post_ra>
